<compile_context>
chip_gen: v5e
topology: v5e:2x2
jax: 0.10.0
libtpu: 0.0.40
codegen_flags: <defaults>
</compile_context>

<pallas_src>
import jax
import jax.numpy as jnp
from jax.experimental import pallas as pl
from jax.experimental.pallas import tpu as pltpu


def _round_up(x, m):
    return ((x + m - 1) // m) * m


def _spatial_rel_kernel(x_ref, w1_ref, b1_ref, w2ts_ref, colsum_ref, obias_ref, o_ref):
    # ---- Linear(2H -> H) on the MXU: bf16 operands, f32 accumulation ----
    x_bf = x_ref[...].astype(jnp.bfloat16)           # cast in-kernel (no HBM pass)
    h = jnp.dot(x_bf, w1_ref[...], preferred_element_type=jnp.float32)
    # ---- bias + ReLU (f32) ----
    h = jnp.maximum(h + b1_ref[...], 0.0)

    # ---- BertLayerNorm statistics, ONE pass, f32: E[h], E[h^2] ----
    inv_h = 1.0 / h.shape[-1]                         # static python float
    s1 = jnp.sum(h, axis=-1, keepdims=True)           # (tm, 1)
    s2 = jnp.sum(h * h, axis=-1, keepdims=True)       # (tm, 1)
    mean = s1 * inv_h
    var = s2 * inv_h - mean * mean
    inv_std = jax.lax.rsqrt(var + 1e-12)

    # ---- Dropout: identity in eval mode ----

    # ---- Linear(H -> 2) with gamma/beta folded in; VPU/XLU only ----
    # o_k = inv_std * (sum_j h_j * w2ts[k,j] - mean * colsum_k) + out_bias_k
    w2ts = w2ts_ref[...]                               # (2, H) f32 (= w2t * gamma)
    colsum = colsum_ref[...]                           # (1, 2) f32
    obias = obias_ref[...]                             # (1, 2) f32
    p0 = jnp.sum(h * w2ts[0:1, :], axis=-1, keepdims=True)   # (tm, 1)
    p1 = jnp.sum(h * w2ts[1:2, :], axis=-1, keepdims=True)   # (tm, 1)
    o_ref[:, 0:1] = inv_std * (p0 - mean * colsum[:, 0:1]) + obias[:, 0:1]
    o_ref[:, 1:2] = inv_std * (p1 - mean * colsum[:, 1:2]) + obias[:, 1:2]


def _tpu_budget():
    """(vmem_limit_bytes, tm_max) per TPU generation, with safe fallback."""
    try:
        cap = pltpu.get_tpu_info().vmem_capacity_bytes
    except Exception:
        cap = None
    if cap is not None and cap >= 100 * 1024 * 1024:
        # v5e / v6e: 128 MiB physical VMEM per TensorCore -> use most of it.
        return 100 * 1024 * 1024, 1024
    # v7x (64 MiB physical) or unknown: leave headroom for compiler scratch.
    return 48 * 1024 * 1024, 512


def spatial_rel_regression(x, params, *, tm=None, vmem_limit_bytes=None):
    """x: (N, 2H) float32 -> (N, 2) float32."""
    w1, b1, gamma, beta, w2t, b2 = params
    N, in_dim = x.shape
    H = w1.shape[1]
    assert in_dim == 2 * H

    budget, tm_max = _tpu_budget()
    if vmem_limit_bytes is None:
        vmem_limit_bytes = budget

    if tm is None:
        # >= 2 grid steps so v7x's two TensorCores both get work; cheap on
        # single-TC chips (one extra ~0.35us step).
        tm = min(tm_max, _round_up(pl.cdiv(N, 2), 8))
        # Crude VMEM clamp: double-buffered bf16 W1 is fixed cost; per row we
        # hold 2x (2H) f32 input buffers + ~3x (H) f32 temps.
        fixed = 2 * (2 * H * H * 2) + 64 * 1024
        per_row = 2 * (2 * H * 4) + 3 * (H * 4)
        max_rows = max(8, (vmem_limit_bytes - fixed) // per_row)
        tm = min(tm, (max_rows // 8) * 8)
    tm = max(8, _round_up(tm, 8))

    # ---- fold gamma/beta into the output projection (tiny param-side ops) ----
    w1_bf = w1.astype(jnp.bfloat16)                    # one-time, param-sized
    w2ts = w2t * gamma                                 # (2, H)
    colsum = jnp.sum(w2ts, axis=-1).reshape(1, 2)      # (1, 2)
    obias = (beta @ w2t.T).reshape(1, 2) + b2          # (1, 2)

    grid = (pl.cdiv(N, tm),)                           # ragged last block is masked
    return pl.pallas_call(
        _spatial_rel_kernel,
        out_shape=jax.ShapeDtypeStruct((N, 2), jnp.float32),
        grid_spec=pltpu.PrefetchScalarGridSpec(
            num_scalar_prefetch=0,
            grid=grid,
            in_specs=[
                pl.BlockSpec((tm, in_dim), lambda i: (i, 0)),   # x tile (f32)
                pl.BlockSpec((in_dim, H), lambda i: (0, 0)),    # W1 (bf16, full)
                pl.BlockSpec((1, H), lambda i: (0, 0)),         # b1
                pl.BlockSpec((2, H), lambda i: (0, 0)),         # W2^T * gamma
                pl.BlockSpec((1, 2), lambda i: (0, 0)),         # colsum
                pl.BlockSpec((1, 2), lambda i: (0, 0)),         # folded out bias
            ],
            out_specs=pl.BlockSpec((tm, 2), lambda i: (i, 0)),
        ),
        compiler_params=pltpu.CompilerParams(
            dimension_semantics=("parallel",),
            vmem_limit_bytes=vmem_limit_bytes,
        ),
    )(x, w1_bf, b1, w2ts, colsum, obias)


def init_params(key, hidden_size):
    """Deterministic synthetic parameters matching the module's shapes."""
    k1, k2, k3, k4 = jax.random.split(key, 4)
    H = hidden_size
    # Linear(2H -> H): weight (in, out) layout for the kernel, plus bias.
    w1 = jax.random.normal(k1, (2 * H, H), jnp.float32) * 0.02
    b1 = jax.random.normal(k2, (1, H), jnp.float32) * 0.02
    # BertLayerNorm(H): gamma init 1, beta init 0 (as in PyTorch).
    gamma = jnp.ones((1, H), jnp.float32)
    beta = jnp.zeros((1, H), jnp.float32)
    # Linear(H -> 2): stored transposed (2, H) for the VPU projection path.
    w2t = jax.random.normal(k3, (2, H), jnp.float32) * 0.02
    b2 = jax.random.normal(k4, (1, 2), jnp.float32) * 0.02
    return (w1, b1, gamma, beta, w2t, b2)


def reference(x, params):
    """Pure-JAX f32 reference (standard two-pass LN, unfolded params)."""
    w1, b1, gamma, beta, w2t, b2 = params
    h = jnp.maximum(x @ w1 + b1, 0.0)
    mean = jnp.mean(h, axis=-1, keepdims=True)
    var = jnp.mean((h - mean) ** 2, axis=-1, keepdims=True)
    hn = (h - mean) / jnp.sqrt(var + 1e-12)
    hn = hn * gamma + beta
    return hn @ w2t.T + b2


if __name__ == "__main__":
    hidden_size = 32
    batch, seq = 2, 8
    N = batch * seq                         # 16 rows

    key = jax.random.PRNGKey(0)
    kx, kp = jax.random.split(key)
    # Module input: (..., hidden_size * 2); leading dims flattened to N.
    x = jax.random.normal(kx, (N, 2 * hidden_size), jnp.float32)
    params = init_params(kp, hidden_size)

    out = jax.block_until_ready(spatial_rel_regression(x, params))

    ref = reference(x, params)
    assert out.shape == (N, 2)
    # bf16 matmul operands -> compare against f32 reference with a loose bound.
    assert jnp.allclose(out, ref, atol=2e-2, rtol=2e-2), "mismatch vs reference"

    print("KERNEL_OK")
</pallas_src>

<mosaic_0001>
module attributes {stable_mosaic.version = 11 : i64} {
  func.func @_spatial_rel_kernel(%arg0: i32, %arg1: memref<8x64xf32, #tpu.memory_space<vmem>>, %arg2: memref<64x32xbf16, #tpu.memory_space<vmem>>, %arg3: memref<1x32xf32, #tpu.memory_space<vmem>>, %arg4: memref<2x32xf32, #tpu.memory_space<vmem>>, %arg5: memref<1x2xf32, #tpu.memory_space<vmem>>, %arg6: memref<1x2xf32, #tpu.memory_space<vmem>>, %arg7: memref<8x2xf32, #tpu.memory_space<vmem>>) attributes {dimension_semantics = [#tpu.dimension_semantics<parallel>], iteration_bounds = array<i64: 2>, scalar_prefetch = 0 : i64, scratch_operands = 0 : i64, tpu.core_type = #tpu.core_type<tc>, window_params = [{transform_indices = @transform_0, window_bounds = array<i64: 8, 64>}, {pipeline_mode = #tpu.pipeline_mode<synchronous>, transform_indices = @transform_1, window_bounds = array<i64: 64, 32>}, {pipeline_mode = #tpu.pipeline_mode<synchronous>, transform_indices = @transform_2, window_bounds = array<i64: 1, 32>}, {pipeline_mode = #tpu.pipeline_mode<synchronous>, transform_indices = @transform_3, window_bounds = array<i64: 2, 32>}, {pipeline_mode = #tpu.pipeline_mode<synchronous>, transform_indices = @transform_4, window_bounds = array<i64: 1, 2>}, {pipeline_mode = #tpu.pipeline_mode<synchronous>, transform_indices = @transform_5, window_bounds = array<i64: 1, 2>}, {transform_indices = @transform_6, window_bounds = array<i64: 8, 2>}]} {
    %c0 = arith.constant 0 : index
    %c0_0 = arith.constant 0 : index
    %0 = vector.load %arg1[%c0, %c0_0] : memref<8x64xf32, #tpu.memory_space<vmem>>, vector<8x64xf32>
    %1 = arith.truncf %0 : vector<8x64xf32> to vector<8x64xbf16>
    %c0_1 = arith.constant 0 : index
    %c0_2 = arith.constant 0 : index
    %2 = vector.load %arg2[%c0_1, %c0_2] : memref<64x32xbf16, #tpu.memory_space<vmem>>, vector<64x32xbf16>
    %cst = arith.constant dense<0.000000e+00> : vector<8x32xf32>
    %3 = tpu.matmul %1, %2, %cst {dimension_numbers = #tpu.dot_dimension_numbers<[1], [0], [0], [1], [0, 0, 1, 1], [], []>} : vector<8x64xbf16>, vector<64x32xbf16>, vector<8x32xf32> -> vector<8x32xf32>
    %c0_3 = arith.constant 0 : index
    %c0_4 = arith.constant 0 : index
    %4 = vector.load %arg3[%c0_3, %c0_4] : memref<1x32xf32, #tpu.memory_space<vmem>>, vector<1x32xf32>
    %5 = vector.broadcast %4 : vector<1x32xf32> to vector<8x32xf32>
    %6 = arith.addf %3, %5 : vector<8x32xf32>
    %cst_5 = arith.constant 0.000000e+00 : f32
    %7 = vector.broadcast %cst_5 : f32 to vector<8x32xf32>
    %8 = arith.maximumf %6, %7 : vector<8x32xf32>
    %cst_6 = arith.constant dense<0.000000e+00> : vector<8xf32>
    %9 = vector.multi_reduction <add>, %8, %cst_6 [1] : vector<8x32xf32> to vector<8xf32>
    %10 = vector.shape_cast %9 : vector<8xf32> to vector<8x1xf32>
    %11 = arith.mulf %8, %8 : vector<8x32xf32>
    %cst_7 = arith.constant dense<0.000000e+00> : vector<8xf32>
    %12 = vector.multi_reduction <add>, %11, %cst_7 [1] : vector<8x32xf32> to vector<8xf32>
    %13 = vector.shape_cast %12 : vector<8xf32> to vector<8x1xf32>
    %cst_8 = arith.constant 3.125000e-02 : f32
    %14 = vector.broadcast %cst_8 : f32 to vector<8x1xf32>
    %15 = arith.mulf %10, %14 : vector<8x1xf32>
    %cst_9 = arith.constant 3.125000e-02 : f32
    %16 = vector.broadcast %cst_9 : f32 to vector<8x1xf32>
    %17 = arith.mulf %13, %16 : vector<8x1xf32>
    %18 = arith.mulf %15, %15 : vector<8x1xf32>
    %19 = arith.subf %17, %18 : vector<8x1xf32>
    %cst_10 = arith.constant 9.99999996E-13 : f32
    %20 = vector.broadcast %cst_10 : f32 to vector<8x1xf32>
    %21 = arith.addf %19, %20 : vector<8x1xf32>
    %22 = math.rsqrt %21 : vector<8x1xf32>
    %c0_11 = arith.constant 0 : index
    %c0_12 = arith.constant 0 : index
    %23 = vector.load %arg4[%c0_11, %c0_12] : memref<2x32xf32, #tpu.memory_space<vmem>>, vector<2x32xf32>
    %c0_13 = arith.constant 0 : index
    %c0_14 = arith.constant 0 : index
    %24 = vector.load %arg5[%c0_13, %c0_14] : memref<1x2xf32, #tpu.memory_space<vmem>>, vector<1x2xf32>
    %c0_15 = arith.constant 0 : index
    %c0_16 = arith.constant 0 : index
    %25 = vector.load %arg6[%c0_15, %c0_16] : memref<1x2xf32, #tpu.memory_space<vmem>>, vector<1x2xf32>
    %26 = vector.extract_strided_slice %23 {offsets = [0, 0], sizes = [1, 32], strides = [1, 1]} : vector<2x32xf32> to vector<1x32xf32>
    %27 = vector.broadcast %26 : vector<1x32xf32> to vector<8x32xf32>
    %28 = arith.mulf %8, %27 : vector<8x32xf32>
    %cst_17 = arith.constant dense<0.000000e+00> : vector<8xf32>
    %29 = vector.multi_reduction <add>, %28, %cst_17 [1] : vector<8x32xf32> to vector<8xf32>
    %30 = vector.shape_cast %29 : vector<8xf32> to vector<8x1xf32>
    %31 = vector.extract_strided_slice %23 {offsets = [1, 0], sizes = [1, 32], strides = [1, 1]} : vector<2x32xf32> to vector<1x32xf32>
    %32 = vector.broadcast %31 : vector<1x32xf32> to vector<8x32xf32>
    %33 = arith.mulf %8, %32 : vector<8x32xf32>
    %cst_18 = arith.constant dense<0.000000e+00> : vector<8xf32>
    %34 = vector.multi_reduction <add>, %33, %cst_18 [1] : vector<8x32xf32> to vector<8xf32>
    %35 = vector.shape_cast %34 : vector<8xf32> to vector<8x1xf32>
    %36 = vector.extract_strided_slice %24 {offsets = [0, 0], sizes = [1, 1], strides = [1, 1]} : vector<1x2xf32> to vector<1x1xf32>
    %37 = vector.broadcast %36 : vector<1x1xf32> to vector<8x1xf32>
    %38 = arith.mulf %15, %37 : vector<8x1xf32>
    %39 = arith.subf %30, %38 : vector<8x1xf32>
    %40 = arith.mulf %22, %39 : vector<8x1xf32>
    %41 = vector.extract_strided_slice %25 {offsets = [0, 0], sizes = [1, 1], strides = [1, 1]} : vector<1x2xf32> to vector<1x1xf32>
    %42 = vector.broadcast %41 : vector<1x1xf32> to vector<8x1xf32>
    %43 = arith.addf %40, %42 : vector<8x1xf32>
    %c0_19 = arith.constant 0 : index
    %c0_20 = arith.constant 0 : index
    %44 = vector.load %arg7[%c0_19, %c0_20] : memref<8x2xf32, #tpu.memory_space<vmem>>, vector<8x1xf32>
    tpu.vector_store %arg7[%c0_19, %c0_20], %43 {strides = array<i32>} : memref<8x2xf32, #tpu.memory_space<vmem>>, vector<8x1xf32>,
    %45 = vector.extract_strided_slice %24 {offsets = [0, 1], sizes = [1, 1], strides = [1, 1]} : vector<1x2xf32> to vector<1x1xf32>
    %46 = vector.broadcast %45 : vector<1x1xf32> to vector<8x1xf32>
    %47 = arith.mulf %15, %46 : vector<8x1xf32>
    %48 = arith.subf %35, %47 : vector<8x1xf32>
    %49 = arith.mulf %22, %48 : vector<8x1xf32>
    %50 = vector.extract_strided_slice %25 {offsets = [0, 1], sizes = [1, 1], strides = [1, 1]} : vector<1x2xf32> to vector<1x1xf32>
    %51 = vector.broadcast %50 : vector<1x1xf32> to vector<8x1xf32>
    %52 = arith.addf %49, %51 : vector<8x1xf32>
    %c0_21 = arith.constant 0 : index
    %c1 = arith.constant 1 : index
    %53 = vector.load %arg7[%c0_21, %c1] : memref<8x2xf32, #tpu.memory_space<vmem>>, vector<8x1xf32>
    tpu.vector_store %arg7[%c0_21, %c1], %52 {strides = array<i32>} : memref<8x2xf32, #tpu.memory_space<vmem>>, vector<8x1xf32>,
    return
  }
  func.func @transform_0(%arg0: i32) -> (i32, i32) {
    %c0_i32 = arith.constant 0 : i32
    %c0_i32_0 = arith.constant 0 : i32
    return %arg0, %c0_i32 : i32, i32
  }
  func.func @transform_1(%arg0: i32) -> (i32, i32) {
    %c0_i32 = arith.constant 0 : i32
    %c0_i32_0 = arith.constant 0 : i32
    %c0_i32_1 = arith.constant 0 : i32
    return %c0_i32, %c0_i32_0 : i32, i32
  }
  func.func @transform_2(%arg0: i32) -> (i32, i32) {
    %c0_i32 = arith.constant 0 : i32
    %c0_i32_0 = arith.constant 0 : i32
    %c0_i32_1 = arith.constant 0 : i32
    return %c0_i32, %c0_i32_0 : i32, i32
  }
  func.func @transform_3(%arg0: i32) -> (i32, i32) {
    %c0_i32 = arith.constant 0 : i32
    %c0_i32_0 = arith.constant 0 : i32
    %c0_i32_1 = arith.constant 0 : i32
    return %c0_i32, %c0_i32_0 : i32, i32
  }
  func.func @transform_4(%arg0: i32) -> (i32, i32) {
    %c0_i32 = arith.constant 0 : i32
    %c0_i32_0 = arith.constant 0 : i32
    %c0_i32_1 = arith.constant 0 : i32
    return %c0_i32, %c0_i32_0 : i32, i32
  }
  func.func @transform_5(%arg0: i32) -> (i32, i32) {
    %c0_i32 = arith.constant 0 : i32
    %c0_i32_0 = arith.constant 0 : i32
    %c0_i32_1 = arith.constant 0 : i32
    return %c0_i32, %c0_i32_0 : i32, i32
  }
  func.func @transform_6(%arg0: i32) -> (i32, i32) {
    %c0_i32 = arith.constant 0 : i32
    %c0_i32_0 = arith.constant 0 : i32
    return %arg0, %c0_i32 : i32, i32
  }
}

</mosaic_0001>

<bundles_post_ra>
// kernel: tpu_custom_call.1
= control target key start
LH: loop header
LB: loop body
LE: loop exit
PB: predicated region body
PF: predicated region fallthrough
CT: control target
= control target key end

     0   :  { %s496_s21 = smov 0   ;;  %s544_s0 = inlined_call_operand.vmem [shape: f32[16,64], index: 0, kind: input, shape index: {}]   ;;  %s545_s1 = inlined_call_operand.vmem [shape: bf16[64,32], index: 1, kind: input, shape index: {}]   ;;  %s546_s2 = inlined_call_operand.vmem [shape: f32[1,32], index: 2, kind: input, shape index: {}]   ;;  %s547_s3 = inlined_call_operand.vmem [shape: f32[2,32], index: 3, kind: input, shape index: {}]   ;;  %s548_s4 = inlined_call_operand.vmem [shape: f32[1,2], index: 4, kind: input, shape index: {}]   ;;  %s549_s5 = inlined_call_operand.vmem [shape: f32[1,2], index: 5, kind: input, shape index: {}]   ;;  %s550_s6 = inlined_call_operand.vmem [shape: f32[16,2], index: 6, kind: output, shape index: {}]  }
   0x1 LB: > { %s410_s22 = sadd.s32 4294967295, %s459_s21   ;;  %p414_p0 = scmp.ge.s32.totalorder %s459_s21, 1  ;;  %s459_s21 = sphi %s496_s21, %s16_s21  }
   0x2   : > { %p211_p1 = scmp.lt.s32.totalorder %s459_s21, 3 }
   0x4   : > { %p212_p2 = pnand %p414_p0, %p211_p1 }
   0x5   : > { %p239_p3 = scmp.lt.s32.totalorder (!%p212_p2), %s410_s22, 1 }
   0x6   : > { %215 = sbr.rel (%p212_p2) target bundleno = 312 (0x138), region = 44 }
   0xb   : > { %v439_v0 = vld [vmem:[%s545_s1 + $0x18] sm:$0xff]  ;;  %v438_v1 = vld [vmem:[%s545_s1 + $0x10] sm:$0xff]  ;;  %s552_s22 = smov (!%p239_p3, %s410_s22), 1  ;;  %v437_v2 = vld [vmem:[%s545_s1 + $0x8] sm:$0xff]  ;;  %vm286_vm0 = vcmask 523264   ;;  %vm304_vm1 = vcmask 261120  }
   0xc   : > { %294 = vmatpush.bf16.msra.mxu0 %v439_v0  ;;  %s415_s27 = sshll.u32 %s552_s22, 3  ;;  %v436_v3 = vld [vmem:[%s545_s1] sm:$0xff]  ;;  %vm350_vm5 = vcmask 7168   ;;  %vm355_vm6 = vcmask 15368  }
   0xd   : > { %s242_s8 = scalar_lea.vmem %s544_s0, %s415_s27  ;;  %v448_v6 = vld [vmem:[%s546_s2] ss:$0 sm:$0xff]  ;;  %s246_s23 = scalar_lea.vmem %s550_s6, %s415_s27 }
   0xe   : > { %v248_v4 = vld [vmem:[%s242_s8] sm:$0xff] }
   0xf   : > { %v249_v5 = vpack.c.bf16 %v248_v4, %v248_v4  ;;  %v327_v7 = vld [vmem:[%s547_s3] sm:$0x3] }
  0x10   : > { %295 = vmatpush.bf16.msra.mxu0 %v438_v1  ;;  %v330_v10 = vperm.slane %v327_v7, 0  ;;  %v335_v15 = vperm.slane %v327_v7, 1  ;;  %v449_v31 = vld [vmem:[%s548_s4] ss:$0 sm:$0xff] }
  0x11   : > { %v450_v39 = vld [vmem:[%s549_s5] ss:$0 sm:$0xff] }
  0x14   : > { %296 = vmatpush.bf16.msra.mxu0 %v437_v2 }
  0x18   : > { %297 = vmatpush.bf16.msra.mxu0 %v436_v3 }
  0x1b   : > { %433 = vmatmul.msk.bf16.vlgmr.msra.gmra.mxu0 %vm286_vm0, %v249_v5 }
  0x98   : > { %v299_v8 = vpop.f32.mrf.mxu0 }
  0x99   : > { %v300_v9 = vadd.f32 %v448_v6, %v299_v8 }
  0x9b   : > { %v303_v11 = vmax.f32 %v300_v9, 0.0 }
  0x9d   : > { %v305_v12 = vsel %vm304_vm1, %v303_v11, 0.0  ;;  %v331_v13 = vmul.f32 %v330_v10, %v303_v11  ;;  %v308_v17 = vmul.f32 %v303_v11, %v303_v11  ;;  %v336_v18 = vmul.f32 %v335_v15, %v303_v11 }
  0x9e   : > { %306 = vadd.xlane.f32.xlu0 %v305_v12 }
  0x9f   : > { %v332_v14 = vsel %vm304_vm1, %v331_v13, 0.0  ;;  %v309_v19 = vsel %vm304_vm1, %v308_v17, 0.0  ;;  %v337_v20 = vsel %vm304_vm1, %v336_v18, 0.0 }
  0xa0   : > { %v301_v16 = vpop.f32.mrf.mxu0  ;;  %333 = vadd.xlane.f32.xlu1 %v332_v14 }
  0xa6   : > { %310 = vadd.xlane.f32.xlu0 %v309_v19 }
  0xa8   : > { %338 = vadd.xlane.f32.xlu1 %v337_v20 }
 0x111   : > { %v307_v21 = vpop.xlane.xlu0 %306 }
 0x112   : > { %v312_v22 = vmul.f32 0.03125, %v307_v21 }
 0x113   : > { %v334_v28 = vpop.xlane.xlu1 %333 }
 0x114   : > { %v314_v24 = vmul.f32 %v312_v22, %v312_v22  ;;  %v343_v34 = vmul.f32 %v449_v31, %v312_v22 }
 0x116   : > { %v344_v38 = vsub.f32 %v334_v28, %v343_v34 }
 0x119   : > { %v311_v23 = vpop.xlane.xlu0 %310 }
 0x11a   : > { %v313_v25 = vmul.f32 0.03125, %v311_v23 }
 0x11b   : > { %v339_v36 = vpop.xlane.xlu1 %338 }
 0x11c   : > { %v315_v26 = vsub.f32 %v313_v25, %v314_v24  ;;  %v352_v40 = vsub.f32 %v339_v36, %v343_v34 }
 0x11e   : > { %v316_v27 = vadd.f32 1e-12, %v315_v26 }
 0x120   : > { %451 = vrsqrt.f32 %v316_v27  ;;  %vm323_vm3 = vweird.f32 %v316_v27 }
 0x126   : > { %v452_v29 = vpop.eup %451 }
 0x127   : > { %v318_v30 = vmul.f32 %v452_v29, %v316_v27  ;;  %vm324_vm2 = vweird.f32 %v452_v29 }
 0x128   : > { %vm325_vm4 = vmor %vm323_vm3, %vm324_vm2 }
 0x129   : > { %v319_v32 = vmul.f32 %v452_v29, %v318_v30 }
 0x12b   : > { %v320_v33 = vmul.f32 0.5, %v319_v32 }
 0x12d   : > { %v321_v35 = vsub.f32 1.5, %v320_v33 }
 0x12f   : > { %v322_v37 = vmul.f32 %v452_v29, %v321_v35 }
 0x131   : > { %v326_v41 = vsel %vm325_vm4, %v452_v29, %v322_v37 }
 0x132   : > { %v345_v42 = vmul.f32 %v344_v38, %v326_v41  ;;  %v353_v43 = vmul.f32 %v352_v40, %v326_v41 }
 0x134   : > { %v349_v44 = vadd.f32 %v450_v39, %v345_v42  ;;  %v354_v45 = vadd.f32 %v450_v39, %v353_v43 }
 0x136   : > { %351 = vst.msk [vmem:[%s246_s23] sm:$0xff] %vm350_vm5, %v349_v44 }
 0x137   : > { %356 = vst.msk [vmem:[%s246_s23] sm:$0xff] %vm355_vm6, %v354_v45 }
 0x138 PF: > { %s16_s21 = sadd.s32 1, %s459_s21  }
 0x139   : > { %p13_p4 = scmp.ge.s32.totalorder %s16_s21, 4  }
 0x13b   :  { %15 = sbr.rel (!%p13_p4) target bundleno = 1 (0x1), region = 74 }

</bundles_post_ra>
